<compile_context>
chip_gen: v5e
topology: v5e:2x2
jax: 0.10.0
libtpu: 0.0.40
codegen_flags: <defaults>
</compile_context>

<pallas_src>
import functools

import jax
import jax.numpy as jnp
from jax.experimental import pallas as pl
from jax.experimental.pallas import tpu as pltpu

LANE = 128  # TPU vreg lane width


# --------------------------------------------------------------------------- #
# Kernels
# --------------------------------------------------------------------------- #
def _mlp_kernel_transposed(x_ref, w1_ref, b1_ref, w2_ref, b2_ref, w3_ref, b3_ref,
                           o_ref, *, cast_bf16):
    """input_dim == output_dim == 1 path, computed with batch on the lane axis.

    Shapes (TB = batch tile, H = n_hid):
      x: (1, TB)   w1,b1,b2,w3: (H, 1)   w2: (H, H)   b3: (1, 1)   out: (1, TB)
    """
    x = x_ref[...]                                                   # (1, TB)

    # fc1 + ReLU: K = 1, so a VPU broadcast-multiply (no wasted MXU pass).
    h1 = jnp.maximum(w1_ref[...] * x + b1_ref[...], 0.0)             # (H, TB)

    # fc2 + ReLU: canonical MXU matmul, full lane occupancy (N = TB).
    w2 = w2_ref[...]
    if cast_bf16:
        h1 = h1.astype(jnp.bfloat16)
        w2 = w2.astype(jnp.bfloat16)
    h2 = jnp.dot(w2, h1, preferred_element_type=jnp.float32) + b2_ref[...]
    h2 = jnp.maximum(h2, 0.0)                                        # (H, TB)

    # fc3: M = 1, so VPU multiply + sublane reduce instead of a 1-row MXU pass.
    out = jnp.sum(w3_ref[...] * h2, axis=0, keepdims=True) + b3_ref[...]  # (1, TB)
    o_ref[...] = out.astype(o_ref.dtype)                             # lane-dense store


def _mlp_kernel_general(x_ref, w1_ref, b1_ref, w2_ref, b2_ref, w3_ref, b3_ref,
                        o_ref, *, cast_bf16):
    """General path.  Weights are pre-transposed (outside) to (K, N): y = x @ W + b."""
    x = x_ref[...]                                                   # (TB, IN)
    w1 = w1_ref[...]                                                 # (IN, H)

    if w1.shape[0] == 1:                                             # input_dim == 1
        h1 = x * w1 + b1_ref[...]                                    # VPU broadcast
    else:
        if cast_bf16:
            x = x.astype(jnp.bfloat16)
            w1 = w1.astype(jnp.bfloat16)
        h1 = jnp.dot(x, w1, preferred_element_type=jnp.float32) + b1_ref[...]
    h1 = jnp.maximum(h1, 0.0)                                        # (TB, H)

    w2 = w2_ref[...]
    h1m = h1
    if cast_bf16:
        h1m = h1.astype(jnp.bfloat16)
        w2 = w2.astype(jnp.bfloat16)
    h2 = jnp.dot(h1m, w2, preferred_element_type=jnp.float32) + b2_ref[...]
    h2 = jnp.maximum(h2, 0.0)                                        # (TB, H)

    w3 = w3_ref[...]                                                 # (H, OUT)
    h2m = h2
    if cast_bf16:
        h2m = h2.astype(jnp.bfloat16)
        w3 = w3.astype(jnp.bfloat16)
    out = jnp.dot(h2m, w3, preferred_element_type=jnp.float32) + b3_ref[...]
    # Note: for 1 < output_dim < 128 these stores are masked partial vst (perf
    # cliff only, not a correctness issue).  The module's own config uses the
    # transposed kernel above instead.
    o_ref[...] = out.astype(o_ref.dtype)                             # (TB, OUT)


# --------------------------------------------------------------------------- #
# Wrapper
# --------------------------------------------------------------------------- #
def _pick_tile(batch, tile_b, align):
    """Whole batch if it fits in one tile, else the largest multiple of `align`."""
    if batch <= tile_b:
        return batch
    return max(align, (tile_b // align) * align)


def _vmem_limit_bytes(weight_arrays, tile_elems):
    w_bytes = sum(int(a.size) * a.dtype.itemsize for a in weight_arrays)
    est = 2 * (w_bytes + 4 * int(tile_elems))        # 2x headroom over rough estimate
    return int(min(128 * 1024 * 1024, max(32 * 1024 * 1024, est)))


def net_forward(x, params, *, tile_b=1024, cast_bf16=None):
    """Fused forward pass of Net.  x: (batch, input_dim) f32.

    params are in PyTorch nn.Linear layout:
      w1 (n_hid, input_dim), b1 (n_hid,), w2 (n_hid, n_hid), b2 (n_hid,),
      w3 (output_dim, n_hid), b3 (output_dim,)
    """
    w1, b1, w2, b2, w3, b3 = params
    batch, input_dim = x.shape
    n_hid = w2.shape[0]
    output_dim = w3.shape[0]
    if cast_bf16 is None:
        cast_bf16 = n_hid >= 256    # bf16 MXU operands (f32 accum) once layer 2 matters

    flops = 2 * batch * (input_dim * n_hid + n_hid * n_hid + n_hid * output_dim)

    def resident(a):
        # Weight/bias blocks: same block every grid step -> VMEM-resident.
        # Single-buffered: a second pipeline buffer would only burn VMEM.
        nd = a.ndim
        return pl.BlockSpec(a.shape, lambda i: (0,) * nd,
                            pipeline_mode=pl.Buffered(1))

    if input_dim == 1 and output_dim == 1:
        # -------- fully transposed, lane-dense path (the module's actual config) --
        xt = x.reshape(1, batch)                 # (batch,1) -> (1,batch): free for a vector
        w1k = w1.reshape(n_hid, 1)               # torch fc1.weight is already (H, 1)
        b1k = b1.reshape(n_hid, 1)
        w2k = w2                                 # torch layout == column form: h2 = W2 @ h1
        b2k = b2.reshape(n_hid, 1)
        w3k = w3.reshape(n_hid, 1)               # (1, H) -> (H, 1): free for a vector
        b3k = b3.reshape(1, 1)
        weights = (w1k, b1k, w2k, b2k, w3k, b3k)

        tb = _pick_tile(batch, tile_b, align=LANE)     # last-dim blocks need %128 if tiled
        grid = (pl.cdiv(batch, tb),)
        param_bytes = sum(int(a.size) * a.dtype.itemsize for a in weights)
        cost = pl.CostEstimate(
            flops=int(flops), transcendentals=0,
            bytes_accessed=int(4 * batch * (input_dim + output_dim) + param_bytes))

        y = pl.pallas_call(
            functools.partial(_mlp_kernel_transposed, cast_bf16=cast_bf16),
            out_shape=jax.ShapeDtypeStruct((1, batch), jnp.float32),
            grid=grid,
            in_specs=[pl.BlockSpec((1, tb), lambda i: (0, i))]
                     + [resident(a) for a in weights],
            out_specs=pl.BlockSpec((1, tb), lambda i: (0, i)),
            compiler_params=pltpu.CompilerParams(
                dimension_semantics=("parallel",),
                vmem_limit_bytes=_vmem_limit_bytes(weights, tb * (4 * n_hid + 4))),
            cost_estimate=cost,
        )(xt, *weights)
        return y.reshape(batch, output_dim)      # (1,batch) -> (batch,1): free

    # ------------------ general path: canonical (K, N) weights --------------------
    w1k = w1.T                                   # (IN, H)  -- host-side, once per call
    b1k = b1.reshape(1, n_hid)
    w2k = w2.T                                   # (H, H)
    b2k = b2.reshape(1, n_hid)
    w3k = w3.T                                   # (H, OUT)
    b3k = b3.reshape(1, output_dim)
    weights = (w1k, b1k, w2k, b2k, w3k, b3k)

    tb = _pick_tile(batch, tile_b, align=8)      # sublane-dim blocks need %8 if tiled
    grid = (pl.cdiv(batch, tb),)
    param_bytes = sum(int(a.size) * a.dtype.itemsize for a in weights)
    cost = pl.CostEstimate(
        flops=int(flops), transcendentals=0,
        bytes_accessed=int(4 * batch * (input_dim + output_dim) + param_bytes))

    y = pl.pallas_call(
        functools.partial(_mlp_kernel_general, cast_bf16=cast_bf16),
        out_shape=jax.ShapeDtypeStruct((batch, output_dim), jnp.float32),
        grid=grid,
        in_specs=[pl.BlockSpec((tb, input_dim), lambda i: (i, 0))]
                 + [resident(a) for a in weights],
        out_specs=pl.BlockSpec((tb, output_dim), lambda i: (i, 0)),
        compiler_params=pltpu.CompilerParams(
            dimension_semantics=("parallel",),
            vmem_limit_bytes=_vmem_limit_bytes(
                weights, tb * (3 * n_hid + input_dim + output_dim) * 2)),
        cost_estimate=cost,
    )(x, *weights)
    return y


# --------------------------------------------------------------------------- #
# Params / reference
# --------------------------------------------------------------------------- #
def init_params(key, input_dim, output_dim, n_hid, std=0.1):
    """Mirror Net.weight_init: weights ~ N(0, std), biases = 0 (torch layout)."""
    k1, k2, k3 = jax.random.split(key, 3)
    w1 = std * jax.random.normal(k1, (n_hid, input_dim), jnp.float32)
    w2 = std * jax.random.normal(k2, (n_hid, n_hid), jnp.float32)
    w3 = std * jax.random.normal(k3, (output_dim, n_hid), jnp.float32)
    b1 = jnp.zeros((n_hid,), jnp.float32)
    b2 = jnp.zeros((n_hid,), jnp.float32)
    b3 = jnp.zeros((output_dim,), jnp.float32)
    return (w1, b1, w2, b2, w3, b3)


def net_forward_ref(x, params):
    """Plain-JAX reference (torch layout: y = x @ W.T + b)."""
    w1, b1, w2, b2, w3, b3 = params
    h1 = jnp.maximum(x @ w1.T + b1, 0.0)
    h2 = jnp.maximum(h1 @ w2.T + b2, 0.0)
    return h2 @ w3.T + b3


# --------------------------------------------------------------------------- #
# Demo / checks
# --------------------------------------------------------------------------- #
if __name__ == "__main__":
    # Shapes from the original script: x ~ U(-4,4), (30,1), sorted; Net(1, 1, n_hid).
    batch, input_dim, output_dim, n_hid = 30, 1, 1, 32

    key = jax.random.PRNGKey(0)
    kx, kp, kx2, kp2 = jax.random.split(key, 4)
    x = jnp.sort(jax.random.uniform(kx, (batch, input_dim), jnp.float32,
                                    minval=-4.0, maxval=4.0), axis=0)
    params = init_params(kp, input_dim, output_dim, n_hid, std=0.1)

    y = jax.block_until_ready(net_forward(x, params))
    assert y.shape == (batch, output_dim)
    assert jnp.allclose(y, net_forward_ref(x, params), atol=1e-5, rtol=1e-5), \
        "transposed path mismatch vs reference"

    # Multi-tile transposed path (grid > 1, partial last lane-tile).
    xb = jax.random.uniform(kx2, (320, 1), jnp.float32, minval=-4.0, maxval=4.0)
    yb = jax.block_until_ready(net_forward(xb, params, tile_b=128))
    assert jnp.allclose(yb, net_forward_ref(xb, params), atol=1e-5, rtol=1e-5), \
        "tiled transposed path mismatch vs reference"

    # General (input_dim > 1, output_dim > 1) path smoke test.
    params_g = init_params(kp2, 3, 2, n_hid, std=0.1)
    xg = jax.random.uniform(kx2, (16, 3), jnp.float32, minval=-1.0, maxval=1.0)
    yg = jax.block_until_ready(net_forward(xg, params_g))
    assert yg.shape == (16, 2)
    assert jnp.allclose(yg, net_forward_ref(xg, params_g), atol=1e-5, rtol=1e-5), \
        "general path mismatch vs reference"

    print("KERNEL_OK")
</pallas_src>

<mosaic_0001>
module attributes {stable_mosaic.version = 11 : i64} {
  func.func @_mlp_kernel_transposed(%arg0: i32, %arg1: memref<1x30xf32, #tpu.memory_space<vmem>>, %arg2: memref<32x1xf32, #tpu.memory_space<vmem>>, %arg3: memref<32x1xf32, #tpu.memory_space<vmem>>, %arg4: memref<32x32xf32, #tpu.memory_space<vmem>>, %arg5: memref<32x1xf32, #tpu.memory_space<vmem>>, %arg6: memref<32x1xf32, #tpu.memory_space<vmem>>, %arg7: memref<1x1xf32, #tpu.memory_space<vmem>>, %arg8: memref<1x30xf32, #tpu.memory_space<vmem>>) attributes {dimension_semantics = [#tpu.dimension_semantics<parallel>], iteration_bounds = array<i64: 1>, scalar_prefetch = 0 : i64, scratch_operands = 0 : i64, tpu.core_type = #tpu.core_type<tc>, window_params = [{transform_indices = @transform_0, window_bounds = array<i64: 1, 30>}, {pipeline_mode = #tpu.pipeline_mode<synchronous>, transform_indices = @transform_1, window_bounds = array<i64: 32, 1>}, {pipeline_mode = #tpu.pipeline_mode<synchronous>, transform_indices = @transform_2, window_bounds = array<i64: 32, 1>}, {pipeline_mode = #tpu.pipeline_mode<synchronous>, transform_indices = @transform_3, window_bounds = array<i64: 32, 32>}, {pipeline_mode = #tpu.pipeline_mode<synchronous>, transform_indices = @transform_4, window_bounds = array<i64: 32, 1>}, {pipeline_mode = #tpu.pipeline_mode<synchronous>, transform_indices = @transform_5, window_bounds = array<i64: 32, 1>}, {pipeline_mode = #tpu.pipeline_mode<synchronous>, transform_indices = @transform_6, window_bounds = array<i64: 1, 1>}, {transform_indices = @transform_7, window_bounds = array<i64: 1, 30>}]} {
    %c0 = arith.constant 0 : index
    %c0_0 = arith.constant 0 : index
    %0 = vector.load %arg1[%c0, %c0_0] : memref<1x30xf32, #tpu.memory_space<vmem>>, vector<1x30xf32>
    %c0_1 = arith.constant 0 : index
    %c0_2 = arith.constant 0 : index
    %1 = vector.load %arg2[%c0_1, %c0_2] : memref<32x1xf32, #tpu.memory_space<vmem>>, vector<32x1xf32>
    %2 = vector.broadcast %1 : vector<32x1xf32> to vector<32x30xf32>
    %3 = vector.broadcast %0 : vector<1x30xf32> to vector<32x30xf32>
    %4 = arith.mulf %2, %3 : vector<32x30xf32>
    %c0_3 = arith.constant 0 : index
    %c0_4 = arith.constant 0 : index
    %5 = vector.load %arg3[%c0_3, %c0_4] : memref<32x1xf32, #tpu.memory_space<vmem>>, vector<32x1xf32>
    %6 = vector.broadcast %5 : vector<32x1xf32> to vector<32x30xf32>
    %7 = arith.addf %4, %6 : vector<32x30xf32>
    %cst = arith.constant 0.000000e+00 : f32
    %8 = vector.broadcast %cst : f32 to vector<32x30xf32>
    %9 = arith.maximumf %7, %8 : vector<32x30xf32>
    %c0_5 = arith.constant 0 : index
    %c0_6 = arith.constant 0 : index
    %10 = vector.load %arg4[%c0_5, %c0_6] : memref<32x32xf32, #tpu.memory_space<vmem>>, vector<32x32xf32>
    %cst_7 = arith.constant dense<0.000000e+00> : vector<32x30xf32>
    %11 = tpu.matmul %10, %9, %cst_7 {dimension_numbers = #tpu.dot_dimension_numbers<[1], [0], [0], [1], [0, 0, 1, 1], [], []>} : vector<32x32xf32>, vector<32x30xf32>, vector<32x30xf32> -> vector<32x30xf32>
    %c0_8 = arith.constant 0 : index
    %c0_9 = arith.constant 0 : index
    %12 = vector.load %arg5[%c0_8, %c0_9] : memref<32x1xf32, #tpu.memory_space<vmem>>, vector<32x1xf32>
    %13 = vector.broadcast %12 : vector<32x1xf32> to vector<32x30xf32>
    %14 = arith.addf %11, %13 : vector<32x30xf32>
    %cst_10 = arith.constant 0.000000e+00 : f32
    %15 = vector.broadcast %cst_10 : f32 to vector<32x30xf32>
    %16 = arith.maximumf %14, %15 : vector<32x30xf32>
    %c0_11 = arith.constant 0 : index
    %c0_12 = arith.constant 0 : index
    %17 = vector.load %arg6[%c0_11, %c0_12] : memref<32x1xf32, #tpu.memory_space<vmem>>, vector<32x1xf32>
    %18 = vector.broadcast %17 : vector<32x1xf32> to vector<32x30xf32>
    %19 = arith.mulf %18, %16 : vector<32x30xf32>
    %cst_13 = arith.constant dense<0.000000e+00> : vector<30xf32>
    %20 = vector.multi_reduction <add>, %19, %cst_13 [0] : vector<32x30xf32> to vector<30xf32>
    %21 = vector.shape_cast %20 : vector<30xf32> to vector<1x30xf32>
    %c0_14 = arith.constant 0 : index
    %c0_15 = arith.constant 0 : index
    %22 = vector.load %arg7[%c0_14, %c0_15] : memref<1x1xf32, #tpu.memory_space<vmem>>, vector<1x1xf32>
    %23 = vector.broadcast %22 : vector<1x1xf32> to vector<1x30xf32>
    %24 = arith.addf %21, %23 : vector<1x30xf32>
    %c0_16 = arith.constant 0 : index
    %c0_17 = arith.constant 0 : index
    %25 = vector.load %arg8[%c0_16, %c0_17] : memref<1x30xf32, #tpu.memory_space<vmem>>, vector<1x30xf32>
    tpu.vector_store %arg8[%c0_16, %c0_17], %24 {strides = array<i32>} : memref<1x30xf32, #tpu.memory_space<vmem>>, vector<1x30xf32>,
    return
  }
  func.func @transform_0(%arg0: i32) -> (i32, i32) {
    %c0_i32 = arith.constant 0 : i32
    %c0_i32_0 = arith.constant 0 : i32
    return %c0_i32, %arg0 : i32, i32
  }
  func.func @transform_1(%arg0: i32) -> (i32, i32) {
    %c0_i32 = arith.constant 0 : i32
    %c0_i32_0 = arith.constant 0 : i32
    %c0_i32_1 = arith.constant 0 : i32
    return %c0_i32, %c0_i32_0 : i32, i32
  }
  func.func @transform_2(%arg0: i32) -> (i32, i32) {
    %c0_i32 = arith.constant 0 : i32
    %c0_i32_0 = arith.constant 0 : i32
    %c0_i32_1 = arith.constant 0 : i32
    return %c0_i32, %c0_i32_0 : i32, i32
  }
  func.func @transform_3(%arg0: i32) -> (i32, i32) {
    %c0_i32 = arith.constant 0 : i32
    %c0_i32_0 = arith.constant 0 : i32
    %c0_i32_1 = arith.constant 0 : i32
    return %c0_i32, %c0_i32_0 : i32, i32
  }
  func.func @transform_4(%arg0: i32) -> (i32, i32) {
    %c0_i32 = arith.constant 0 : i32
    %c0_i32_0 = arith.constant 0 : i32
    %c0_i32_1 = arith.constant 0 : i32
    return %c0_i32, %c0_i32_0 : i32, i32
  }
  func.func @transform_5(%arg0: i32) -> (i32, i32) {
    %c0_i32 = arith.constant 0 : i32
    %c0_i32_0 = arith.constant 0 : i32
    %c0_i32_1 = arith.constant 0 : i32
    return %c0_i32, %c0_i32_0 : i32, i32
  }
  func.func @transform_6(%arg0: i32) -> (i32, i32) {
    %c0_i32 = arith.constant 0 : i32
    %c0_i32_0 = arith.constant 0 : i32
    %c0_i32_1 = arith.constant 0 : i32
    return %c0_i32, %c0_i32_0 : i32, i32
  }
  func.func @transform_7(%arg0: i32) -> (i32, i32) {
    %c0_i32 = arith.constant 0 : i32
    %c0_i32_0 = arith.constant 0 : i32
    return %c0_i32, %arg0 : i32, i32
  }
}

</mosaic_0001>

<bundles_post_ra>
// kernel: tpu_custom_call.1
= control target key start
LH: loop header
LB: loop body
LE: loop exit
PB: predicated region body
PF: predicated region fallthrough
CT: control target
= control target key end

     0   :  { %s398_s0 = inlined_call_operand.vmem [shape: f32[1,30], index: 0, kind: input, shape index: {}]   ;;  %s399_s1 = inlined_call_operand.vmem [shape: f32[32,1], index: 1, kind: input, shape index: {}]   ;;  %s400_s2 = inlined_call_operand.vmem [shape: f32[32,1], index: 2, kind: input, shape index: {}]   ;;  %s401_s3 = inlined_call_operand.vmem [shape: f32[32,32], index: 3, kind: input, shape index: {}]   ;;  %s402_s4 = inlined_call_operand.vmem [shape: f32[32,1], index: 4, kind: input, shape index: {}]   ;;  %s403_s5 = inlined_call_operand.vmem [shape: f32[32,1], index: 5, kind: input, shape index: {}]   ;;  %s404_s6 = inlined_call_operand.<no memory space> [shape: f32[1,1], index: 6, kind: input, shape index: {}]   ;;  %s405_s7 = inlined_call_operand.hbm [shape: f32[1,30], index: 7, kind: output, shape index: {}]  }
   0x1   :  { %v12_v0 = vstv %s404_s6 }
   0x2   :  { %13 = vst [vmem:[#allocation2] sm:$0x1] %v12_v0 }
   0x3   :  { %v63_v1 = vld [vmem:[%s400_s2 + $0x10] sm:$0xff]  ;;  %v64_v2 = vld [vmem:[%s400_s2 + $0x18] sm:$0xff]  ;;  %v283_v4 = vmov 0  }
   0x4   :  { %v33_v3 = vld [vmem:[%s399_s1 + $0x18] sm:$0xff]  ;;  %255 = vset.pattern.permute.xlu2 %v283_v4  ;;  %254 = vset.pattern.permute.xlu1 %v283_v4 }
   0x5   :  { %253 = vset.pattern.permute.xlu0 %v283_v4  ;;  %77 = vperm.xlu2 %255, %v63_v1  }
   0x6   :  { %82 = vperm.xlu1 %254, %v64_v2   ;;  %51 = vperm.xlu0 %253, %v33_v3  }
   0x7   :  { %14 = vsyncpa [#allocation4], 0  ;;  %v30_v5 = vld [vmem:[%s399_s1] sm:$0xff]  ;;  %v32_v6 = vld [vmem:[%s399_s1 + $0x10] sm:$0xff]  ;;  %vm121_vm0 = vcmask 261120   ;;  %vm195_vm1 = vcmask 244736  }
   0x8   :  { %v31_v7 = vld [vmem:[%s399_s1 + $0x8] sm:$0xff]  ;;  %v97_v8 = vld [vmem:[%s402_s4] sm:$0xff]  ;;  %v100_v11 = vld [vmem:[%s402_s4 + $0x18] sm:$0xff]  ;;  %s226_s18 = sshll.u32 %s405_s7, 4  ;;  %vm217_vm2 = vcmask 237568   ;;  %s227_s18 = int_to_ptr.hbm [resolvable:$true] %s226_s18 }
   0x9   :  { %v62_v9 = vld [vmem:[%s400_s2 + $0x8] sm:$0xff]  ;;  %v61_v10 = vld [vmem:[%s400_s2] sm:$0xff]  ;;  %v99_v13 = vld [vmem:[%s402_s4 + $0x10] sm:$0xff] }
   0xa   :  { %v98_v12 = vld [vmem:[%s402_s4 + $0x8] sm:$0xff]  ;;  %v169_v14 = vld [vmem:[%s403_s5 + $0x10] sm:$0xff]  ;;  %v167_v15 = vld [vmem:[%s403_s5] sm:$0xff] }
   0xb   :  { %v168_v16 = vld [vmem:[%s403_s5 + $0x8] sm:$0xff]  ;;  %v170_v17 = vld [vmem:[%s403_s5 + $0x18] sm:$0xff]  ;;  %v209_v18 = vld [vmem:[#allocation2] sm:$0x1] }
   0xc   :  { %v256_v19 = vld [vmem:[%s398_s0] ss:$0 sm:$0xff]  ;;  %v94_v41 = vld [vmem:[%s401_s3 + $0x8] sm:$0xff]  ;;  %v95_v42 = vld [vmem:[%s401_s3 + $0x10] sm:$0xff] }
   0xd   :  { %36 = vperm.xlu2 %255, %v30_v5   ;;  %v93_v40 = vld [vmem:[%s401_s3] sm:$0xff]  ;;  %v96_v43 = vld [vmem:[%s401_s3 + $0x18] sm:$0xff]  ;;  %s284_s3 = smov [#allocation3]  }
   0xe   :  { %46 = vperm.xlu0 %253, %v32_v6   ;;  %41 = vperm.xlu1 %254, %v31_v7   ;;  %s224_s15 = sshll.u32 %s284_s3, 4  ;;  %s225_s15 = int_to_ptr.vmem [resolvable:$true] %s224_s15 }
  0x15   :  { %103 = vperm.xlu2 %255, %v97_v8  }
  0x16   :  { %72 = vperm.xlu0 %253, %v62_v9   ;;  %67 = vperm.xlu1 %254, %v61_v10  }
  0x1d   :  { %118 = vperm.xlu2 %255, %v100_v11  }
  0x1e   :  { %108 = vperm.xlu0 %253, %v98_v12   ;;  %113 = vperm.xlu1 %254, %v99_v13  }
  0x25   :  { %183 = vperm.xlu2 %255, %v169_v14  }
  0x26   :  { %173 = vperm.xlu0 %253, %v167_v15   ;;  %178 = vperm.xlu1 %254, %v168_v16  }
  0x2e   :  { %188 = vperm.xlu0 %253, %v170_v17   ;;  %212 = vperm.xlu1 %254, %v209_v18  }
  0x5f   :  { %v78_v24 = vpop.permute.xlu2 %77 }
  0x67   :  { %v37_v31 = vpop.permute.xlu2 %36 }
  0x68   :  { %v57_v32 = vmul.f32 %v256_v19, %v37_v31 }
  0x6f   :  { %v104_v44 = vpop.permute.xlu2 %103 }
  0x77   :  { %v119_v49 = vpop.permute.xlu2 %118 }
  0x78   :  { %v83_v20 = vpop.permute.xlu1 %82  ;;  %v52_v21 = vpop.permute.xlu0 %51 }
  0x79   :  { %v60_v22 = vmul.f32 %v256_v19, %v52_v21 }
  0x7b   :  { %v88_v23 = vadd.f32 %v83_v20, %v60_v22 }
  0x7d   :  { %v92_v25 = vmax.f32 %v88_v23, 0.0 }
  0x7f   :  { %146 = vmatpush.msra.mxu0 %v92_v25  ;;  %239 = vmatpush.msra.mxu1 %v92_v25  ;;  %v184_v2 = vpop.permute.xlu2 %183 }
  0x80   :  { %240 = vmatpush.msra.mxu2 %v92_v25  ;;  %241 = vmatpush.msra.mxu3 %v92_v25  ;;  %v47_v26 = vpop.permute.xlu0 %46  ;;  %v42_v27 = vpop.permute.xlu1 %41 }
  0x81   :  { %v59_v28 = vmul.f32 %v256_v19, %v47_v26  ;;  %v58_v33 = vmul.f32 %v256_v19, %v42_v27 }
  0x83   :  { %v87_v29 = vadd.f32 %v78_v24, %v59_v28 }
  0x85   :  { %v91_v30 = vmax.f32 %v87_v29, 0.0 }
  0x87   :  { %147 = vmatpush.msra.mxu0 %v91_v30  ;;  %242 = vmatpush.msra.mxu1 %v91_v30 }
  0x88   :  { %243 = vmatpush.msra.mxu2 %v91_v30  ;;  %244 = vmatpush.msra.mxu3 %v91_v30  ;;  %v73_v34 = vpop.permute.xlu0 %72  ;;  %v68_v35 = vpop.permute.xlu1 %67 }
  0x89   :  { %v86_v36 = vadd.f32 %v73_v34, %v58_v33  ;;  %v85_v37 = vadd.f32 %v68_v35, %v57_v32 }
  0x8b   :  { %v90_v38 = vmax.f32 %v86_v36, 0.0  ;;  %v89_v39 = vmax.f32 %v85_v37, 0.0 }
  0x8d   :  { %148 = vmatpush.msra.mxu0 %v90_v38  ;;  %245 = vmatpush.msra.mxu1 %v90_v38 }
  0x8e   :  { %246 = vmatpush.msra.mxu2 %v90_v38  ;;  %247 = vmatpush.msra.mxu3 %v90_v38 }
  0x8f   :  { %149 = vmatpush.msra.mxu0 %v89_v39  ;;  %248 = vmatpush.msra.mxu1 %v89_v39 }
  0x90   :  { %249 = vmatpush.msra.mxu2 %v89_v39  ;;  %250 = vmatpush.msra.mxu3 %v89_v39  ;;  %v109_v45 = vpop.permute.xlu0 %108  ;;  %v114_v46 = vpop.permute.xlu1 %113 }
  0x91   :  { %235 = vmatmul.msk.f32.vlgmr.msra.gmra.mxu0 %vm121_vm0, %v93_v40  ;;  %236 = vmatmul.msk.f32.vlgmr.msra.gmra.mxu1 %vm121_vm0, %v94_v41 }
  0x92   :  { %237 = vmatmul.msk.f32.vlgmr.msra.gmra.mxu2 %vm121_vm0, %v95_v42  ;;  %238 = vmatmul.msk.f32.vlgmr.msra.gmra.mxu3 %vm121_vm0, %v96_v43 }
  0x98   :  { %v174_v50 = vpop.permute.xlu0 %173  ;;  %v179_v55 = vpop.permute.xlu1 %178 }
  0xa0   :  { %v189_v3 = vpop.permute.xlu0 %188  ;;  %v213_v15 = vpop.permute.xlu1 %212 }
  0xa1   :  { %v215_v17 = vperm.slane %v213_v15, 0 }
 0x10e   :  { %v151_v47 = vpop.f32.mrf.mxu0  ;;  %v154_v48 = vpop.f32.mrf.mxu1 }
 0x10f   :  { %v152_v51 = vadd.f32 %v151_v47, %v104_v44  ;;  %v155_v52 = vadd.f32 %v154_v48, %v109_v45 }
 0x111   :  { %v163_v53 = vmax.f32 %v152_v51, 0.0  ;;  %v164_v54 = vmax.f32 %v155_v52, 0.0 }
 0x113   :  { %v191_v56 = vmul.f32 %v174_v50, %v163_v53  ;;  %v192_v57 = vmul.f32 %v179_v55, %v164_v54 }
 0x115   :  { %v157_v58 = vpop.f32.mrf.mxu2  ;;  %v160_v59 = vpop.f32.mrf.mxu3  ;;  %v196_v62 = vsel %vm195_vm1, %v191_v56, 0.0  ;;  %v197_v63 = vsel %vm195_vm1, %v192_v57, 0.0 }
 0x116   :  { %v158_v60 = vadd.f32 %v157_v58, %v114_v46  ;;  %v161_v61 = vadd.f32 %v160_v59, %v119_v49  ;;  %v198_v6 = vadd.f32 %v197_v63, %v196_v62 }
 0x118   :  { %v165_v0 = vmax.f32 %v158_v60, 0.0  ;;  %v166_v1 = vmax.f32 %v161_v61, 0.0 }
 0x11a   :  { %v193_v4 = vmul.f32 %v184_v2, %v165_v0  ;;  %v194_v5 = vmul.f32 %v189_v3, %v166_v1 }
 0x11c   :  { %v199_v7 = vsel %vm195_vm1, %v193_v4, 0.0  ;;  %v201_v9 = vsel %vm195_vm1, %v194_v5, 0.0 }
 0x11d   :  { %v200_v8 = vadd.f32 %v199_v7, %v198_v6 }
 0x11f   :  { %v202_v10 = vadd.f32 %v201_v9, %v200_v8 }
 0x121   :  { %v203_v11 = vrot.slane %v202_v10, 4 }
 0x123   :  { %v204_v12 = vadd.f32 %v203_v11, %v202_v10 }
 0x125   :  { %v205_v13 = vrot.slane %v204_v12, 2 }
 0x127   :  { %v206_v14 = vadd.f32 %v205_v13, %v204_v12 }
 0x129   :  { %v207_v16 = vrot.slane %v206_v14, 1 }
 0x12b   :  { %v208_v18 = vadd.f32 %v207_v16, %v206_v14 }
 0x12d   :  { %v216_v19 = vadd.f32 %v215_v17, %v208_v18 }
 0x12f   :  { %218 = vst.msk [vmem:[#allocation3] sm:$0x1] %vm217_vm2, %v216_v19 }
 0x130   :  { %229 = dma.vmem_to_hbm [thread:$0]  %s225_s15, 16, %s227_s18, [#allocation4]  }
 0x131   :  { %281 = dma.done.wait [#allocation4], 16  }
 0x132   :  { %282 = vsyncadd [#allocation4], 4294967280 }
 0x133   :  { %234 = vsyncpa [#allocation4], 1 }

</bundles_post_ra>
